<compile_context>
chip_gen: v5e
topology: v5e:2x2
jax: 0.10.0
libtpu: 0.0.40
codegen_flags: <defaults>
</compile_context>

<pallas_src>
import math
import functools

import jax
import jax.numpy as jnp
from jax.experimental import pallas as pl
from jax.experimental.pallas import tpu as pltpu


def _round_up(n: int, m: int) -> int:
    return ((n + m - 1) // m) * m


def qnetwork_kernel(x_ref, w1_ref, b1_ref, w2_ref, b2_ref, w3_ref, b3_ref,
                    o_ref):
    # x_ref: (TB, S); w1: (S, H); w2: (H, H); w3: (H, A);
    # biases: (1, H)/(1, H)/(1, A); o_ref: (TB, A)
    x = x_ref[...]
    # Layer 1: Linear + ReLU (MXU matmul, f32 accumulate)
    h1 = jnp.dot(x, w1_ref[...], preferred_element_type=jnp.float32) + b1_ref[...]
    h1 = jnp.maximum(h1, 0.0)
    # Layer 2: Linear + ReLU
    h2 = jnp.dot(h1, w2_ref[...], preferred_element_type=jnp.float32) + b2_ref[...]
    h2 = jnp.maximum(h2, 0.0)
    # Layer 3: Linear (Q-value head, no activation)
    q = jnp.dot(h2, w3_ref[...], preferred_element_type=jnp.float32) + b3_ref[...]
    o_ref[...] = q.astype(o_ref.dtype)


@functools.partial(jax.jit, static_argnames=("tb",))
def qnetwork_forward(x, params, *, tb: int = 2048):
    """x: (B, state_size) f32; params: dict with w1,b1,w2,b2,w3,b3.

    Weights are (in_features, out_features): the kernel computes x @ W + b,
    same math as PyTorch's x @ W.T + b with its (out, in) layout.
    """
    w1 = params["w1"].astype(jnp.float32)
    b1 = params["b1"].astype(jnp.float32).reshape(1, -1)
    w2 = params["w2"].astype(jnp.float32)
    b2 = params["b2"].astype(jnp.float32).reshape(1, -1)
    w3 = params["w3"].astype(jnp.float32)
    b3 = params["b3"].astype(jnp.float32).reshape(1, -1)
    x = x.astype(jnp.float32)

    B, S = x.shape
    H = w1.shape[1]
    A = w3.shape[1]

    # Batch tile: large (amortizes per-grid-step overhead) but capped so
    # training batches give >= 2 grid steps for v7x's second TensorCore.
    TB = min(tb, _round_up(pl.cdiv(B, 2), 8))
    if TB >= B:
        TB = B  # tiny acting-path batch: single full block (block dim == array dim)
    grid = (pl.cdiv(B, TB),)  # partial last block handled by Pallas masking

    # Accurate (unpadded) traffic / flops so XLA schedules overlap correctly.
    cost = pl.CostEstimate(
        flops=2 * B * (S * H + H * H + H * A),
        transcendentals=0,
        bytes_accessed=4 * (B * S + S * H + H + H * H + H + H * A + A + B * A),
    )

    const = lambda i: (0, 0)  # weights/biases: resident across the batch grid
    out = pl.pallas_call(
        qnetwork_kernel,
        out_shape=jax.ShapeDtypeStruct((B, A), jnp.float32),
        grid=grid,
        in_specs=[
            pl.BlockSpec((TB, S), lambda i: (i, 0)),   # x: tiled over batch
            pl.BlockSpec((S, H), const),               # w1
            pl.BlockSpec((1, H), const),               # b1
            pl.BlockSpec((H, H), const),               # w2
            pl.BlockSpec((1, H), const),               # b2
            pl.BlockSpec((H, A), const),               # w3
            pl.BlockSpec((1, A), const),               # b3
        ],
        out_specs=pl.BlockSpec((TB, A), lambda i: (i, 0)),
        compiler_params=pltpu.CompilerParams(
            dimension_semantics=("parallel",)),
        cost_estimate=cost,
    )(x, w1, b1, w2, b2, w3, b3)

    return out


def init_qnetwork_params(key, state_size, action_size, hidden_size=64):
    """Deterministic init mimicking torch.nn.Linear default (U(+-1/sqrt(fan_in)))."""
    keys = jax.random.split(key, 6)

    def linear(kw, kb, fan_in, fan_out):
        bound = 1.0 / math.sqrt(fan_in)
        w = jax.random.uniform(kw, (fan_in, fan_out), jnp.float32,
                               minval=-bound, maxval=bound)
        b = jax.random.uniform(kb, (fan_out,), jnp.float32,
                               minval=-bound, maxval=bound)
        return w, b

    w1, b1 = linear(keys[0], keys[1], state_size, hidden_size)
    w2, b2 = linear(keys[2], keys[3], hidden_size, hidden_size)
    w3, b3 = linear(keys[4], keys[5], hidden_size, action_size)
    return {"w1": w1, "b1": b1, "w2": w2, "b2": b2, "w3": w3, "b3": b3}


def _reference(x, p):
    h1 = jnp.maximum(x @ p["w1"] + p["b1"], 0.0)
    h2 = jnp.maximum(h1 @ p["w2"] + p["b2"], 0.0)
    return h2 @ p["w3"] + p["b3"]


if __name__ == "__main__":
    key = jax.random.PRNGKey(0)
    k_x, k_p = jax.random.split(key)

    batch = 2
    state_size = 8
    action_size = 4
    hidden_size = 32

    x = jax.random.normal(k_x, (batch, state_size), dtype=jnp.float32)
    params = init_qnetwork_params(k_p, state_size, action_size, hidden_size)

    # Acting-path (tiny batch) call.
    q_values = jax.block_until_ready(qnetwork_forward(x, params))
    ref = _reference(x, params)
    assert q_values.shape == (batch, action_size)
    assert jnp.allclose(q_values, ref, atol=1e-5, rtol=1e-5)

    # Training/replay-path batch: exercises the multi-step grid and the
    # masked partial last block (600 rows -> two blocks of 304).
    x_big = jax.random.normal(jax.random.PRNGKey(1), (600, state_size),
                              dtype=jnp.float32)
    q_big = jax.block_until_ready(qnetwork_forward(x_big, params))
    ref_big = _reference(x_big, params)
    assert q_big.shape == (600, action_size)
    assert jnp.allclose(q_big, ref_big, atol=1e-4, rtol=1e-4)

    print("KERNEL_OK")
</pallas_src>

<mosaic_0001>
module attributes {stable_mosaic.version = 11 : i64} {
  func.func @qnetwork_kernel(%arg0: i32, %arg1: memref<2x8xf32, #tpu.memory_space<vmem>>, %arg2: memref<8x32xf32, #tpu.memory_space<vmem>>, %arg3: memref<1x32xf32, #tpu.memory_space<vmem>>, %arg4: memref<32x32xf32, #tpu.memory_space<vmem>>, %arg5: memref<1x32xf32, #tpu.memory_space<vmem>>, %arg6: memref<32x4xf32, #tpu.memory_space<vmem>>, %arg7: memref<1x4xf32, #tpu.memory_space<vmem>>, %arg8: memref<2x4xf32, #tpu.memory_space<vmem>>) attributes {dimension_semantics = [#tpu.dimension_semantics<parallel>], iteration_bounds = array<i64: 1>, scalar_prefetch = 0 : i64, scratch_operands = 0 : i64, tpu.core_type = #tpu.core_type<tc>, window_params = [{transform_indices = @transform_0, window_bounds = array<i64: 2, 8>}, {pipeline_mode = #tpu.pipeline_mode<synchronous>, transform_indices = @transform_1, window_bounds = array<i64: 8, 32>}, {pipeline_mode = #tpu.pipeline_mode<synchronous>, transform_indices = @transform_2, window_bounds = array<i64: 1, 32>}, {pipeline_mode = #tpu.pipeline_mode<synchronous>, transform_indices = @transform_3, window_bounds = array<i64: 32, 32>}, {pipeline_mode = #tpu.pipeline_mode<synchronous>, transform_indices = @transform_4, window_bounds = array<i64: 1, 32>}, {pipeline_mode = #tpu.pipeline_mode<synchronous>, transform_indices = @transform_5, window_bounds = array<i64: 32, 4>}, {pipeline_mode = #tpu.pipeline_mode<synchronous>, transform_indices = @transform_6, window_bounds = array<i64: 1, 4>}, {transform_indices = @transform_7, window_bounds = array<i64: 2, 4>}]} {
    %c0 = arith.constant 0 : index
    %c0_0 = arith.constant 0 : index
    %0 = vector.load %arg1[%c0, %c0_0] : memref<2x8xf32, #tpu.memory_space<vmem>>, vector<2x8xf32>
    %c0_1 = arith.constant 0 : index
    %c0_2 = arith.constant 0 : index
    %1 = vector.load %arg2[%c0_1, %c0_2] : memref<8x32xf32, #tpu.memory_space<vmem>>, vector<8x32xf32>
    %cst = arith.constant dense<0.000000e+00> : vector<2x32xf32>
    %2 = tpu.matmul %0, %1, %cst {dimension_numbers = #tpu.dot_dimension_numbers<[1], [0], [0], [1], [0, 0, 1, 1], [], []>} : vector<2x8xf32>, vector<8x32xf32>, vector<2x32xf32> -> vector<2x32xf32>
    %c0_3 = arith.constant 0 : index
    %c0_4 = arith.constant 0 : index
    %3 = vector.load %arg3[%c0_3, %c0_4] : memref<1x32xf32, #tpu.memory_space<vmem>>, vector<1x32xf32>
    %4 = vector.broadcast %3 : vector<1x32xf32> to vector<2x32xf32>
    %5 = arith.addf %2, %4 : vector<2x32xf32>
    %cst_5 = arith.constant 0.000000e+00 : f32
    %6 = vector.broadcast %cst_5 : f32 to vector<2x32xf32>
    %7 = arith.maximumf %5, %6 : vector<2x32xf32>
    %c0_6 = arith.constant 0 : index
    %c0_7 = arith.constant 0 : index
    %8 = vector.load %arg4[%c0_6, %c0_7] : memref<32x32xf32, #tpu.memory_space<vmem>>, vector<32x32xf32>
    %cst_8 = arith.constant dense<0.000000e+00> : vector<2x32xf32>
    %9 = tpu.matmul %7, %8, %cst_8 {dimension_numbers = #tpu.dot_dimension_numbers<[1], [0], [0], [1], [0, 0, 1, 1], [], []>} : vector<2x32xf32>, vector<32x32xf32>, vector<2x32xf32> -> vector<2x32xf32>
    %c0_9 = arith.constant 0 : index
    %c0_10 = arith.constant 0 : index
    %10 = vector.load %arg5[%c0_9, %c0_10] : memref<1x32xf32, #tpu.memory_space<vmem>>, vector<1x32xf32>
    %11 = vector.broadcast %10 : vector<1x32xf32> to vector<2x32xf32>
    %12 = arith.addf %9, %11 : vector<2x32xf32>
    %cst_11 = arith.constant 0.000000e+00 : f32
    %13 = vector.broadcast %cst_11 : f32 to vector<2x32xf32>
    %14 = arith.maximumf %12, %13 : vector<2x32xf32>
    %c0_12 = arith.constant 0 : index
    %c0_13 = arith.constant 0 : index
    %15 = vector.load %arg6[%c0_12, %c0_13] : memref<32x4xf32, #tpu.memory_space<vmem>>, vector<32x4xf32>
    %cst_14 = arith.constant dense<0.000000e+00> : vector<2x4xf32>
    %16 = tpu.matmul %14, %15, %cst_14 {dimension_numbers = #tpu.dot_dimension_numbers<[1], [0], [0], [1], [0, 0, 1, 1], [], []>} : vector<2x32xf32>, vector<32x4xf32>, vector<2x4xf32> -> vector<2x4xf32>
    %c0_15 = arith.constant 0 : index
    %c0_16 = arith.constant 0 : index
    %17 = vector.load %arg7[%c0_15, %c0_16] : memref<1x4xf32, #tpu.memory_space<vmem>>, vector<1x4xf32>
    %18 = vector.broadcast %17 : vector<1x4xf32> to vector<2x4xf32>
    %19 = arith.addf %16, %18 : vector<2x4xf32>
    %c0_17 = arith.constant 0 : index
    %c0_18 = arith.constant 0 : index
    %20 = vector.load %arg8[%c0_17, %c0_18] : memref<2x4xf32, #tpu.memory_space<vmem>>, vector<2x4xf32>
    tpu.vector_store %arg8[%c0_17, %c0_18], %19 {strides = array<i32>} : memref<2x4xf32, #tpu.memory_space<vmem>>, vector<2x4xf32>,
    return
  }
  func.func @transform_0(%arg0: i32) -> (i32, i32) {
    %c0_i32 = arith.constant 0 : i32
    %c0_i32_0 = arith.constant 0 : i32
    return %arg0, %c0_i32 : i32, i32
  }
  func.func @transform_1(%arg0: i32) -> (i32, i32) {
    %c0_i32 = arith.constant 0 : i32
    %c0_i32_0 = arith.constant 0 : i32
    %c0_i32_1 = arith.constant 0 : i32
    return %c0_i32, %c0_i32_0 : i32, i32
  }
  func.func @transform_2(%arg0: i32) -> (i32, i32) {
    %c0_i32 = arith.constant 0 : i32
    %c0_i32_0 = arith.constant 0 : i32
    %c0_i32_1 = arith.constant 0 : i32
    return %c0_i32, %c0_i32_0 : i32, i32
  }
  func.func @transform_3(%arg0: i32) -> (i32, i32) {
    %c0_i32 = arith.constant 0 : i32
    %c0_i32_0 = arith.constant 0 : i32
    %c0_i32_1 = arith.constant 0 : i32
    return %c0_i32, %c0_i32_0 : i32, i32
  }
  func.func @transform_4(%arg0: i32) -> (i32, i32) {
    %c0_i32 = arith.constant 0 : i32
    %c0_i32_0 = arith.constant 0 : i32
    %c0_i32_1 = arith.constant 0 : i32
    return %c0_i32, %c0_i32_0 : i32, i32
  }
  func.func @transform_5(%arg0: i32) -> (i32, i32) {
    %c0_i32 = arith.constant 0 : i32
    %c0_i32_0 = arith.constant 0 : i32
    %c0_i32_1 = arith.constant 0 : i32
    return %c0_i32, %c0_i32_0 : i32, i32
  }
  func.func @transform_6(%arg0: i32) -> (i32, i32) {
    %c0_i32 = arith.constant 0 : i32
    %c0_i32_0 = arith.constant 0 : i32
    %c0_i32_1 = arith.constant 0 : i32
    return %c0_i32, %c0_i32_0 : i32, i32
  }
  func.func @transform_7(%arg0: i32) -> (i32, i32) {
    %c0_i32 = arith.constant 0 : i32
    %c0_i32_0 = arith.constant 0 : i32
    return %arg0, %c0_i32 : i32, i32
  }
}

</mosaic_0001>

<bundles_post_ra>
// kernel: qnetwork_forward.1
= control target key start
LH: loop header
LB: loop body
LE: loop exit
PB: predicated region body
PF: predicated region fallthrough
CT: control target
= control target key end

     0   :  { %12 = vsyncpa [#allocation3], 0  ;;  %s424_s0 = inlined_call_operand.hbm [shape: f32[2,8], index: 0, kind: input, shape index: {}]   ;;  %s425_s1 = inlined_call_operand.vmem [shape: f32[8,32], index: 1, kind: input, shape index: {}]   ;;  %s426_s2 = inlined_call_operand.hbm [shape: f32[1,32], index: 2, kind: input, shape index: {}]   ;;  %s427_s3 = inlined_call_operand.vmem [shape: f32[32,32], index: 3, kind: input, shape index: {}]   ;;  %s428_s4 = inlined_call_operand.hbm [shape: f32[1,32], index: 4, kind: input, shape index: {}]   ;;  %s429_s5 = inlined_call_operand.vmem [shape: f32[32,4], index: 5, kind: input, shape index: {}]   ;;  %s430_s6 = inlined_call_operand.hbm [shape: f32[1,4], index: 6, kind: input, shape index: {}]   ;;  %s431_s7 = inlined_call_operand.hbm [shape: f32[2,4], index: 7, kind: output, shape index: {}]  }
   0x1   :  { %13 = vsyncpa [#allocation6], 0 }
   0x2   :  { %14 = vsyncpa [#allocation9], 0  ;;  %s34_s26 = sshll.u32 %s426_s2, 4  ;;  %s35_s26 = int_to_ptr.hbm [resolvable:$true] %s34_s26 }
   0x3   :  { %15 = vsyncpa [#allocation4], 0  ;;  %s337_s27 = smov [#allocation5]   ;;  %s21_s8 = sshll.u32 %s424_s0, 4  ;;  %s22_s8 = int_to_ptr.hbm [resolvable:$true] %s21_s8 }
   0x4   :  { %s36_s28 = sshll.u32 %s337_s27, 4  ;;  %s338_s9 = smov [#allocation2]   ;;  %s37_s28 = int_to_ptr.vmem [resolvable:$true] %s36_s28 }
   0x5   :  { %39 = dma.hbm_to_vmem [thread:$0]  %s35_s26, 16, %s37_s28, [#allocation6]  }
   0x6   :  { %s23_s10 = sshll.u32 %s338_s9, 4  ;;  %s47_s13 = sshll.u32 %s428_s4, 4  ;;  %s24_s10 = int_to_ptr.vmem [resolvable:$true] %s23_s10  ;;  %s48_s13 = int_to_ptr.hbm [resolvable:$true] %s47_s13 }
   0x7   :  { %26 = dma.hbm_to_vmem [thread:$0]  %s22_s8, 32, %s24_s10, [#allocation3]  }
   0x8   :  { %s60_s15 = sshll.u32 %s430_s6, 4  ;;  %s339_s16 = smov [#allocation7]   ;;  %s61_s15 = int_to_ptr.hbm [resolvable:$true] %s60_s15 }
   0x9   :  { %s49_s17 = sshll.u32 %s339_s16, 4  ;;  %s340_s0 = smov [#allocation8]   ;;  %s50_s17 = int_to_ptr.vmem [resolvable:$true] %s49_s17 }
   0xa   :  { %52 = dma.hbm_to_vmem [thread:$0]  %s48_s13, 16, %s50_s17, [#allocation6]  }
   0xb   :  { %s62_s18 = sshll.u32 %s340_s0, 4  ;;  %s63_s18 = int_to_ptr.vmem [resolvable:$true] %s62_s18 }
   0xc   :  { %65 = dma.hbm_to_vmem [thread:$0]  %s61_s15, 16, %s63_s18, [#allocation9]  }
   0xd   :  { %329 = dma.done.wait [#allocation3], 32  }
   0xe   :  { %330 = vsyncadd [#allocation3], 4294967264 }
   0xf   :  { %331 = dma.done.wait [#allocation6], 32  }
  0x10   :  { %332 = vsyncadd [#allocation6], 4294967264 }
  0x11   :  { %333 = dma.done.wait [#allocation9], 16  }
  0x12   :  { %334 = vsyncadd [#allocation9], 4294967280  ;;  %vm88_vm0 = vcmask 64512   ;;  %v83_v0 = vld [vmem:[%s425_s1] sm:$0xff]  ;;  %v116_v2 = vld [vmem:[%s427_s3 + $0x18] sm:$0xff]  ;;  %vm121_vm1 = vcmask 261120  }
  0x13   :  { %v82_v1 = vld [vmem:[#allocation2] sm:$0x3]  ;;  %107 = vmatpush.msra.mxu0 %v83_v0  ;;  %137 = vmatpush.msra.mxu1 %v116_v2  ;;  %v115_v3 = vld [vmem:[%s427_s3 + $0x10] sm:$0xff]  ;;  %v114_v4 = vld [vmem:[%s427_s3 + $0x8] sm:$0xff]  ;;  %s341_s10 = smov [#allocation10]   ;;  %s186_s2 = sshll.u32 %s431_s7, 4  ;;  %s187_s2 = int_to_ptr.hbm [resolvable:$true] %s186_s2 }
  0x14   :  { %198 = vmatmul.msk.f32.vlgmr.msra.gmra.mxu0 %vm88_vm0, %v82_v1  ;;  %v113_v5 = vld [vmem:[%s427_s3] sm:$0xff]  ;;  %v149_v6 = vld [vmem:[%s429_s5 + $0x18] sm:$0xff]  ;;  %v148_v11 = vld [vmem:[%s429_s5 + $0x10] sm:$0xff]  ;;  %s184_s11 = sshll.u32 %s341_s10, 4  ;;  %vm177_vm2 = vcmask 25600   ;;  %s185_s11 = int_to_ptr.vmem [resolvable:$true] %s184_s11 }
  0x15   :  { %138 = vmatpush.msra.mxu1 %v115_v3  ;;  %169 = vmatpush.msra.mxu2 %v149_v6  ;;  %v206_v7 = vld [vmem:[#allocation5] ss:$0 sm:$0xff]  ;;  %v147_v12 = vld [vmem:[%s429_s5 + $0x8] sm:$0xff]  ;;  %v207_v14 = vld [vmem:[#allocation7] ss:$0 sm:$0xff] }
  0x16   :  { %v146_v13 = vld [vmem:[%s429_s5] sm:$0xff] }
  0x17   :  { %139 = vmatpush.msra.mxu1 %v114_v4  ;;  %170 = vmatpush.msra.mxu2 %v148_v11  ;;  %v208_v18 = vld [vmem:[#allocation8] ss:$0 sm:$0xff] }
  0x19   :  { %140 = vmatpush.msra.mxu1 %v113_v5  ;;  %171 = vmatpush.msra.mxu2 %v147_v12 }
  0x1b   :  { %172 = vmatpush.msra.mxu2 %v146_v13 }
  0x91   :  { %v109_v8 = vpop.f32.mrf.mxu0 }
  0x92   :  { %v110_v9 = vadd.f32 %v206_v7, %v109_v8 }
  0x94   :  { %v112_v10 = vmax.f32 %v110_v9, 0.0 }
  0x96   :  { %199 = vmatmul.msk.f32.vlgmr.msra.gmra.mxu1 %vm121_vm1, %v112_v10 }
 0x113   :  { %v142_v15 = vpop.f32.mrf.mxu1 }
 0x114   :  { %v143_v16 = vadd.f32 %v207_v14, %v142_v15 }
 0x116   :  { %v145_v17 = vmax.f32 %v143_v16, 0.0 }
 0x118   :  { %200 = vmatmul.msk.f32.vlgmr.msra.gmra.mxu2 %vm121_vm1, %v145_v17 }
 0x19b   :  { %v174_v19 = vpop.f32.mrf.mxu2 }
 0x19c   :  { %v175_v20 = vadd.f32 %v208_v18, %v174_v19 }
 0x19e   :  { %178 = vst.msk [vmem:[#allocation10] sm:$0x3] %vm177_vm2, %v175_v20 }
 0x19f   :  { %189 = dma.vmem_to_hbm [thread:$0]  %s185_s11, 32, %s187_s2, [#allocation4]  }
 0x1a0   :  { %335 = dma.done.wait [#allocation4], 32  }
 0x1a1   :  { %336 = vsyncadd [#allocation4], 4294967264 }
 0x1a2   :  { %194 = vsyncpa [#allocation3], 1 }
 0x1a3   :  { %195 = vsyncpa [#allocation6], 1 }
 0x1a4   :  { %196 = vsyncpa [#allocation9], 1 }
 0x1a5   :  { %197 = vsyncpa [#allocation4], 1 }

</bundles_post_ra>
